<compile_context>
chip_gen: v7x
topology: tpu7x:2x2x1
jax: 0.10.0
libtpu: 0.0.40
codegen_flags: <defaults>
</compile_context>

<pallas_src>
import numpy as np
import jax
import jax.numpy as jnp
from jax.experimental import pallas as pl
from jax.experimental.pallas import tpu as pltpu

L_PAD = 128          # padded label (lane) dimension
NEG_INF = -1e30      # bias value for padded label columns


def _round_up(x, m):
    return ((x + m - 1) // m) * m


# ----------------------------- Pallas kernel -----------------------------
def _fused_head_kernel(x_ref, w_ref, b_ref, lab_ref, logits_ref, part_ref):
    # x:      [TILE_N, H]   bf16   (dropout is identity in eval mode)
    # w:      [H, L_PAD]    bf16   (pre-transposed, zero-padded columns)
    # b:      [1, L_PAD]    f32    (padded columns = -1e30)
    # labels: [TILE_N, 1]   int32  (attention mask already applied; -1 == ignore)
    x = x_ref[...]
    w = w_ref[...]
    b = b_ref[...]

    # Linear head on the MXU, f32 accumulate; lane-dense [TILE_N, 128] store.
    logits = jnp.dot(x, w, preferred_element_type=jnp.float32) + b
    logits_ref[...] = logits

    # Masked cross-entropy partial sums for this tile (all f32, VPU/XLU/EUP).
    labels = lab_ref[...]                                   # [TILE_N, 1] i32
    active = (labels >= 0).astype(jnp.float32)               # [TILE_N, 1]

    m = jnp.max(logits, axis=-1, keepdims=True)
    lse = m + jnp.log(jnp.sum(jnp.exp(logits - m), axis=-1, keepdims=True))
    lane = jax.lax.broadcasted_iota(jnp.int32, logits.shape, 1)
    onehot = (lane == labels).astype(jnp.float32)             # -1 never matches
    correct = jnp.sum(logits * onehot, axis=-1, keepdims=True)
    per_tok = (lse - correct) * active

    total = jnp.sum(per_tok)
    count = jnp.sum(active)

    out_lane = jax.lax.broadcasted_iota(jnp.int32, part_ref.shape, 2)
    part_ref[...] = jnp.where(out_lane == 0, total,
                              jnp.where(out_lane == 1, count, 0.0))


def fused_token_cls_heads(x_stack, w_stack, b_stack, lab_stack, *, tile_n):
    """x: [T,N_pad,H] bf16, w: [T,H,128] bf16, b: [T,1,128] f32, labels: [T,N_pad,1] i32."""
    T, N_pad, H = x_stack.shape
    assert N_pad % tile_n == 0
    num_tiles = N_pad // tile_n

    logits, partials = pl.pallas_call(
        _fused_head_kernel,
        grid=(T, num_tiles),
        in_specs=[
            pl.BlockSpec((None, tile_n, H), lambda t, i: (t, i, 0)),
            pl.BlockSpec((None, H, L_PAD), lambda t, i: (t, 0, 0)),
            pl.BlockSpec((None, 1, L_PAD), lambda t, i: (t, 0, 0)),
            pl.BlockSpec((None, tile_n, 1), lambda t, i: (t, i, 0)),
        ],
        out_specs=(
            pl.BlockSpec((None, tile_n, L_PAD), lambda t, i: (t, i, 0)),
            pl.BlockSpec((None, 1, 8, L_PAD), lambda t, i: (t, i, 0, 0)),
        ),
        out_shape=(
            jax.ShapeDtypeStruct((T, N_pad, L_PAD), jnp.float32),
            jax.ShapeDtypeStruct((T, num_tiles, 8, L_PAD), jnp.float32),
        ),
        compiler_params=pltpu.CompilerParams(
            dimension_semantics=("parallel", "parallel"),
            vmem_limit_bytes=32 * 1024 * 1024,
        ),
    )(x_stack, w_stack, b_stack, lab_stack)
    return logits, partials


# ----------------------------- Model glue -----------------------------
class Task:
    def __init__(self, task_id, num_labels):
        self.id = task_id
        self.type = "token_classification"
        self.num_labels = num_labels


def init_params(key, hidden_size, tasks):
    """TokenClassificationHead._init_weights: weight ~ N(0, 0.02), bias = 0."""
    params = {}
    for t in tasks:
        key, k = jax.random.split(key)
        w = jax.random.normal(k, (t.num_labels, hidden_size), jnp.float32) * 0.02
        b = jnp.zeros((t.num_labels,), jnp.float32)
        params[t.id] = (w, b)
    return params


def multi_task_forward(params, inputs_embeds, attention_mask, labels, task_ids,
                       *, tile_n=256):
    # TODO(synk): AutoModel.from_pretrained encoder has no in-script equivalent;
    # inputs_embeds is used directly as the encoder output (task_output).
    task_output = inputs_embeds  # [B, S, H]
    B, S, H = task_output.shape

    if attention_mask is None:
        attention_mask = jnp.ones((B, S), jnp.int32)

    task_ids_np = np.asarray(task_ids)
    unique_ids = [int(t) for t in np.unique(task_ids_np)]   # sorted, like torch.unique
    T = len(unique_ids)

    # Host-side task routing (dynamic shapes) mirrors the PyTorch loop; the
    # heavy math below runs as a single fused pallas_call over all tasks.
    sels = [np.nonzero(task_ids_np == tid)[0] for tid in unique_ids]
    n_rows = [len(s) * S for s in sels]
    n_max = max(n_rows)
    eff_tile = min(tile_n, _round_up(max(n_max, 1), 16))   # bf16 sublane multiple
    n_pad = _round_up(n_max, eff_tile)

    x_parts, lab_parts, w_parts, b_parts, num_labels_per_task = [], [], [], [], []
    for ti, tid in enumerate(unique_ids):
        rows_idx = jnp.asarray(sels[ti], jnp.int32)
        n = n_rows[ti]

        x_sel = jnp.take(task_output, rows_idx, axis=0).reshape(n, H)
        x_parts.append(jnp.pad(x_sel, ((0, n_pad - n), (0, 0))))

        am_sel = jnp.take(attention_mask, rows_idx, axis=0).reshape(n)
        if labels is not None:
            lab_sel = jnp.take(labels, rows_idx, axis=0).reshape(n).astype(jnp.int32)
            active_lab = jnp.where(am_sel == 1, lab_sel, -1)
        else:
            active_lab = jnp.full((n,), -1, jnp.int32)
        lab_parts.append(jnp.pad(active_lab, (0, n_pad - n), constant_values=-1))

        w, b = params[tid]
        L = int(w.shape[0])
        assert L <= L_PAD, "num_labels must fit one 128-lane tile"
        num_labels_per_task.append(L)
        # Pre-transpose to [H, L_PAD]; padded columns: zero weights, -1e30 bias.
        w_pad = jnp.zeros((H, L_PAD), jnp.float32).at[:, :L].set(w.T)
        b_pad = jnp.full((L_PAD,), NEG_INF, jnp.float32).at[:L].set(b)
        w_parts.append(w_pad)
        b_parts.append(b_pad)

    x_stack = jnp.stack(x_parts).astype(jnp.bfloat16)              # [T, N_pad, H]
    lab_stack = jnp.stack(lab_parts)[..., None].astype(jnp.int32)  # [T, N_pad, 1]
    w_stack = jnp.stack(w_parts).astype(jnp.bfloat16)              # [T, H, 128]
    b_stack = jnp.stack(b_parts)[:, None, :].astype(jnp.float32)   # [T, 1, 128]

    # Dropout(p=0.1) is identity at inference (eval mode).
    logits_pad, partials = fused_token_cls_heads(
        x_stack, w_stack, b_stack, lab_stack, tile_n=eff_tile)

    # The PyTorch loop returns the LAST unique task's logits.
    last = T - 1
    nb_last = len(sels[last])
    L_last = num_labels_per_task[last]
    logits = logits_pad[last, :nb_last * S, :L_last].reshape(nb_last, S, L_last)

    outputs = (logits, task_output)
    if labels is not None:
        totals = jnp.sum(partials[:, :, 0, 0], axis=1)    # per-task sum of CE
        counts = jnp.sum(partials[:, :, 0, 1], axis=1)    # per-task active tokens
        losses = totals / jnp.maximum(counts, 1.0)        # guard empty selection
        outputs = (losses.mean(),) + outputs
    return outputs


if __name__ == "__main__":
    key = jax.random.PRNGKey(0)
    B, S, H = 2, 8, 32
    tasks = [Task(0, 4), Task(1, 6)]

    k_par, k_emb, k_lab = jax.random.split(key, 3)
    params = init_params(k_par, H, tasks)

    inputs_embeds = jax.random.normal(k_emb, (B, S, H), jnp.float32)
    attention_mask = jnp.ones((B, S), jnp.int32).at[1, 6:].set(0)
    labels = jax.random.randint(k_lab, (B, S), 0, 4)   # valid for both heads
    task_ids = jnp.array([0, 1], jnp.int32)

    out = multi_task_forward(params, inputs_embeds, attention_mask, labels, task_ids)
    out = jax.block_until_ready(out)
    mean_loss, last_logits, task_output = out
    assert last_logits.shape == (1, S, tasks[-1].num_labels)
    assert task_output.shape == (B, S, H)
    assert mean_loss.shape == ()
    assert bool(jnp.isfinite(mean_loss))

    # No-labels path (logits only), mirroring labels=None in the PyTorch forward.
    out2 = jax.block_until_ready(
        multi_task_forward(params, inputs_embeds, attention_mask, None, task_ids))
    assert out2[0].shape == (1, S, tasks[-1].num_labels)
    print("KERNEL_OK")
</pallas_src>

<mosaic_0001>
module attributes {stable_mosaic.version = 11 : i64} {
  func.func @_fused_head_kernel(%arg0: i32, %arg1: i32, %arg2: memref<1x16x32xbf16, #tpu.memory_space<vmem>>, %arg3: memref<1x32x128xbf16, #tpu.memory_space<vmem>>, %arg4: memref<1x1x128xf32, #tpu.memory_space<vmem>>, %arg5: memref<1x16x1xi32, #tpu.memory_space<vmem>>, %arg6: memref<1x16x128xf32, #tpu.memory_space<vmem>>, %arg7: memref<1x1x8x128xf32, #tpu.memory_space<vmem>>) attributes {dimension_semantics = [#tpu.dimension_semantics<parallel>, #tpu.dimension_semantics<parallel>], iteration_bounds = array<i64: 2, 1>, scalar_prefetch = 0 : i64, scratch_operands = 0 : i64, tpu.core_type = #tpu.core_type<tc>, window_params = [{transform_indices = @transform_0, window_bounds = array<i64: 1, 16, 32>}, {transform_indices = @transform_1, window_bounds = array<i64: 1, 32, 128>}, {transform_indices = @transform_2, window_bounds = array<i64: 1, 1, 128>}, {transform_indices = @transform_3, window_bounds = array<i64: 1, 16, 1>}, {transform_indices = @transform_4, window_bounds = array<i64: 1, 16, 128>}, {transform_indices = @transform_5, window_bounds = array<i64: 1, 1, 8, 128>}]} {
    %c0 = arith.constant 0 : index
    %c0_0 = arith.constant 0 : index
    %c0_1 = arith.constant 0 : index
    %0 = vector.load %arg2[%c0, %c0_0, %c0_1] : memref<1x16x32xbf16, #tpu.memory_space<vmem>>, vector<1x16x32xbf16>
    %1 = vector.shape_cast %0 : vector<1x16x32xbf16> to vector<16x32xbf16>
    %c0_2 = arith.constant 0 : index
    %c0_3 = arith.constant 0 : index
    %c0_4 = arith.constant 0 : index
    %2 = vector.load %arg3[%c0_2, %c0_3, %c0_4] : memref<1x32x128xbf16, #tpu.memory_space<vmem>>, vector<1x32x128xbf16>
    %3 = vector.shape_cast %2 : vector<1x32x128xbf16> to vector<32x128xbf16>
    %c0_5 = arith.constant 0 : index
    %c0_6 = arith.constant 0 : index
    %c0_7 = arith.constant 0 : index
    %4 = vector.load %arg4[%c0_5, %c0_6, %c0_7] : memref<1x1x128xf32, #tpu.memory_space<vmem>>, vector<1x1x128xf32>
    %5 = vector.shape_cast %4 : vector<1x1x128xf32> to vector<1x128xf32>
    %cst = arith.constant dense<0.000000e+00> : vector<16x128xf32>
    %6 = tpu.matmul %1, %3, %cst {dimension_numbers = #tpu.dot_dimension_numbers<[1], [0], [0], [1], [0, 0, 1, 1], [], []>} : vector<16x32xbf16>, vector<32x128xbf16>, vector<16x128xf32> -> vector<16x128xf32>
    %7 = vector.broadcast %5 : vector<1x128xf32> to vector<16x128xf32>
    %8 = arith.addf %6, %7 : vector<16x128xf32>
    %c0_8 = arith.constant 0 : index
    %c0_9 = arith.constant 0 : index
    %c0_10 = arith.constant 0 : index
    %9 = vector.load %arg6[%c0_8, %c0_9, %c0_10] : memref<1x16x128xf32, #tpu.memory_space<vmem>>, vector<1x16x128xf32>
    %10 = vector.shape_cast %9 : vector<1x16x128xf32> to vector<16x128xf32>
    %11 = vector.shape_cast %8 : vector<16x128xf32> to vector<1x16x128xf32>
    tpu.vector_store %arg6[%c0_8, %c0_9, %c0_10], %11 {strides = array<i32>} : memref<1x16x128xf32, #tpu.memory_space<vmem>>, vector<1x16x128xf32>,
    %c0_11 = arith.constant 0 : index
    %c0_12 = arith.constant 0 : index
    %c0_13 = arith.constant 0 : index
    %12 = vector.load %arg5[%c0_11, %c0_12, %c0_13] : memref<1x16x1xi32, #tpu.memory_space<vmem>>, vector<1x16x1xi32>
    %13 = vector.shape_cast %12 : vector<1x16x1xi32> to vector<16x1xi32>
    %c0_i32 = arith.constant 0 : i32
    %14 = vector.broadcast %c0_i32 : i32 to vector<16x1xi32>
    %15 = arith.cmpi sge, %13, %14 : vector<16x1xi32>
    %16 = arith.extui %15 : vector<16x1xi1> to vector<16x1xi32>
    %17 = arith.sitofp %16 : vector<16x1xi32> to vector<16x1xf32>
    %cst_14 = arith.constant dense<0xFF800000> : vector<16xf32>
    %18 = vector.multi_reduction <maximumf>, %8, %cst_14 [1] : vector<16x128xf32> to vector<16xf32>
    %19 = vector.shape_cast %18 : vector<16xf32> to vector<16x1xf32>
    %20 = vector.broadcast %19 : vector<16x1xf32> to vector<16x128xf32>
    %21 = arith.subf %8, %20 : vector<16x128xf32>
    %22 = math.exp %21 : vector<16x128xf32>
    %cst_15 = arith.constant dense<0.000000e+00> : vector<16xf32>
    %23 = vector.multi_reduction <add>, %22, %cst_15 [1] : vector<16x128xf32> to vector<16xf32>
    %24 = vector.shape_cast %23 : vector<16xf32> to vector<16x1xf32>
    %25 = math.log %24 : vector<16x1xf32>
    %26 = arith.addf %19, %25 : vector<16x1xf32>
    %27 = tpu.iota {dimensions = array<i32: 1>} : vector<16x128xi32>
    %28 = vector.broadcast %13 : vector<16x1xi32> to vector<16x128xi32>
    %29 = arith.cmpi eq, %27, %28 : vector<16x128xi32>
    %30 = arith.extui %29 : vector<16x128xi1> to vector<16x128xi32>
    %31 = arith.sitofp %30 : vector<16x128xi32> to vector<16x128xf32>
    %32 = arith.mulf %8, %31 : vector<16x128xf32>
    %cst_16 = arith.constant dense<0.000000e+00> : vector<16xf32>
    %33 = vector.multi_reduction <add>, %32, %cst_16 [1] : vector<16x128xf32> to vector<16xf32>
    %34 = vector.shape_cast %33 : vector<16xf32> to vector<16x1xf32>
    %35 = arith.subf %26, %34 : vector<16x1xf32>
    %36 = arith.mulf %35, %17 : vector<16x1xf32>
    %37 = vector.shape_cast %36 : vector<16x1xf32> to vector<1x16x1xf32>
    %cst_17 = arith.constant dense<0.000000e+00> : vector<1xf32>
    %38 = vector.multi_reduction <add>, %37, %cst_17 [1, 2] : vector<1x16x1xf32> to vector<1xf32>
    %39 = vector.shape_cast %38 : vector<1xf32> to vector<1x1x1xf32>
    %40 = vector.extract %39[0, 0, 0] : f32 from vector<1x1x1xf32>
    %41 = vector.shape_cast %17 : vector<16x1xf32> to vector<1x16x1xf32>
    %cst_18 = arith.constant dense<0.000000e+00> : vector<1xf32>
    %42 = vector.multi_reduction <add>, %41, %cst_18 [1, 2] : vector<1x16x1xf32> to vector<1xf32>
    %43 = vector.shape_cast %42 : vector<1xf32> to vector<1x1x1xf32>
    %44 = vector.extract %43[0, 0, 0] : f32 from vector<1x1x1xf32>
    %45 = tpu.iota {dimensions = array<i32: 2>} : vector<1x8x128xi32>
    %c0_i32_19 = arith.constant 0 : i32
    %46 = vector.broadcast %c0_i32_19 : i32 to vector<1x8x128xi32>
    %47 = arith.cmpi eq, %45, %46 : vector<1x8x128xi32>
    %c1_i32 = arith.constant 1 : i32
    %48 = vector.broadcast %c1_i32 : i32 to vector<1x8x128xi32>
    %49 = arith.cmpi eq, %45, %48 : vector<1x8x128xi32>
    %cst_20 = arith.constant 0.000000e+00 : f32
    %50 = vector.broadcast %44 : f32 to vector<1x8x128xf32>
    %51 = vector.broadcast %cst_20 : f32 to vector<1x8x128xf32>
    %52 = arith.select %49, %50, %51 : vector<1x8x128xi1>, vector<1x8x128xf32>
    %53 = vector.broadcast %40 : f32 to vector<1x8x128xf32>
    %54 = arith.select %47, %53, %52 : vector<1x8x128xi1>, vector<1x8x128xf32>
    %c0_21 = arith.constant 0 : index
    %c0_22 = arith.constant 0 : index
    %c0_23 = arith.constant 0 : index
    %c0_24 = arith.constant 0 : index
    %55 = vector.load %arg7[%c0_21, %c0_22, %c0_23, %c0_24] : memref<1x1x8x128xf32, #tpu.memory_space<vmem>>, vector<1x1x8x128xf32>
    %56 = vector.shape_cast %55 : vector<1x1x8x128xf32> to vector<1x8x128xf32>
    %57 = vector.shape_cast %54 : vector<1x8x128xf32> to vector<1x1x8x128xf32>
    tpu.vector_store %arg7[%c0_21, %c0_22, %c0_23, %c0_24], %57 {strides = array<i32>} : memref<1x1x8x128xf32, #tpu.memory_space<vmem>>, vector<1x1x8x128xf32>,
    return
  }
  func.func @transform_0(%arg0: i32, %arg1: i32) -> (i32, i32, i32) {
    %c0_i32 = arith.constant 0 : i32
    %c0_i32_0 = arith.constant 0 : i32
    return %arg0, %arg1, %c0_i32 : i32, i32, i32
  }
  func.func @transform_1(%arg0: i32, %arg1: i32) -> (i32, i32, i32) {
    %c0_i32 = arith.constant 0 : i32
    %c0_i32_0 = arith.constant 0 : i32
    %c0_i32_1 = arith.constant 0 : i32
    return %arg0, %c0_i32, %c0_i32_0 : i32, i32, i32
  }
  func.func @transform_2(%arg0: i32, %arg1: i32) -> (i32, i32, i32) {
    %c0_i32 = arith.constant 0 : i32
    %c0_i32_0 = arith.constant 0 : i32
    %c0_i32_1 = arith.constant 0 : i32
    return %arg0, %c0_i32, %c0_i32_0 : i32, i32, i32
  }
  func.func @transform_3(%arg0: i32, %arg1: i32) -> (i32, i32, i32) {
    %c0_i32 = arith.constant 0 : i32
    %c0_i32_0 = arith.constant 0 : i32
    return %arg0, %arg1, %c0_i32 : i32, i32, i32
  }
  func.func @transform_4(%arg0: i32, %arg1: i32) -> (i32, i32, i32) {
    %c0_i32 = arith.constant 0 : i32
    %c0_i32_0 = arith.constant 0 : i32
    return %arg0, %arg1, %c0_i32 : i32, i32, i32
  }
  func.func @transform_5(%arg0: i32, %arg1: i32) -> (i32, i32, i32, i32) {
    %c0_i32 = arith.constant 0 : i32
    %c0_i32_0 = arith.constant 0 : i32
    %c0_i32_1 = arith.constant 0 : i32
    return %arg0, %arg1, %c0_i32, %c0_i32_0 : i32, i32, i32, i32
  }
}

</mosaic_0001>

<bundles_post_ra>
// kernel: tpu_custom_call.1
= control target key start
LH: loop header
LB: loop body
LE: loop exit
PB: predicated region body
PF: predicated region fallthrough
CT: control target
= control target key end

     0   :  { %11 = vsyncpa [#allocation3], 0  ;;  %s1268_s0 = inlined_call_operand.hbm [shape: bf16[2,16,32], index: 0, kind: input, shape index: {}]   ;;  %s1269_s1 = inlined_call_operand.vmem [shape: bf16[2,32,128], index: 1, kind: input, shape index: {}]   ;;  %s1270_s2 = inlined_call_operand.vmem [shape: f32[2,1,128], index: 2, kind: input, shape index: {}]   ;;  %s1271_s3 = inlined_call_operand.vmem [shape: s32[2,16,1], index: 3, kind: input, shape index: {}]   ;;  %s1272_s4 = inlined_call_operand.hbm [shape: f32[2,16,128], index: 4, kind: output, shape index: {0}]   ;;  %s1273_s5 = inlined_call_operand.hbm [shape: f32[2,1,8,128], index: 5, kind: output, shape index: {1}]  }
   0x1   :  { %13 = vsyncpa [#allocation3 + $0x1], 0 }
   0x2   :  { %14 = vsyncpa [#allocation4], 0 }
   0x3   :  { %16 = vsyncpa [#allocation4 + $0x1], 0 }
   0x4   :  { %17 = vsyncpa [#allocation7], 0 }
   0x5   :  { %19 = vsyncpa [#allocation7 + $0x1], 0  ;;  %s1025_s18 = smov 0   ;;  %s1027_s19 = smov 0  }
   0x6   :  { %s1029_s20 = smov 0   ;;  %s1031_s21 = smov 0  }
   0x7   :  { %s1033_s22 = smov 0   ;;  %s1035_s23 = smov 0  }
   0x8 LB: > { %s702_s24 = sadd.s32 4294967295, %s983_s23   ;;  %s703_s25 = sadd.s32 4294967294, %s983_s23   ;;  %s983_s23 = sphi %s1035_s23, %s25_s23   ;;  %s979_s22 = sphi %s1033_s22, %s1288_s22   ;;  %s975_s21 = sphi %s1031_s21, %s1287_s21   ;;  %s971_s20 = sphi %s1029_s20, %s1286_s20   ;;  %s967_s19 = sphi %s1027_s19, %s1285_s19   ;;  %s963_s18 = sphi %s1025_s18, %s1284_s18  }
   0x9   : > { %s37_s26 = sadd.s32 1, %s979_s22  ;;  %s46_s27 = sadd.s32 1, %s971_s20 }
   0xa   : > { %p39_p0 = scmp.ge.s32.totalorder %s37_s26, 2  ;;  %p53_p1 = scmp.ne.s32.totalorder %s971_s20, %s967_s19 }
   0xb   : > { %p54_p2 = scmp.eq.s32.totalorder %s983_s23, 0  ;;  %p59_p3 = scmp.ne.s32.totalorder %s967_s19, %s963_s18 }
   0xc   : > { %s1290_s26 = smov (%p39_p0, %s37_s26), 0  ;;  %p60_p5 = scmp.eq.s32.totalorder %s702_s24, 0 }
   0xd   : > { %p1066_p4 = por %p54_p2, %p53_p1  ;;  %s41_s29 = ssub.s32 %s979_s22, %s1290_s26 }
   0xe   : > { %p165_p6 = scmp.eq.s32.totalorder %s702_s24, 1  ;;  %p44_p7 = scmp.eq.s32.totalorder %s41_s29, 0 }
   0xf   : > { %p1072_p8 = por %p60_p5, %p59_p3  ;;  %p171_p10 = scmp.eq.s32.totalorder %s703_s25, 1 }
  0x10   : > { %p1076_p9 = por %p165_p6, %p53_p1  ;;  %p769_p13 = scmp.lt.s32.totalorder %s983_s23, 2 }
  0x11   : > { %s1081_s7 = scalar_select %p44_p7, %s971_s20, %s46_s27  }
  0x12   : > { %s1277_s6 = scalar_select %p1076_p9, 1, 0 }
  0x13   : > { %p1083_p11 = por %p171_p10, %p59_p3  ;;  %s219_s9 = sand.u32 1, %s971_s20  }
  0x14   : > { %s706_s10 = sshll.u32 %s219_s9, 3  ;;  %s733_s11 = sshll.u32 %s979_s22, 7 }
  0x15   : > { %s1278_s8 = scalar_select %p1083_p11, 1, 0 }
  0x16   : > { %s1094_s14 = scalar_lea.hbm %s1268_s0, %s733_s11  ;;  %s223_s15 = scalar_lea.vmem [#allocation2], %s706_s10 }
  0x17   : > { %s232_s16 = sshll.u32 %s223_s15, 4  ;;  %p1100_p0 = pnand %p769_p13, %p1066_p4  ;;  %s1096_s16 = int_to_ptr.vmem [resolvable:$true] %s232_s16 }
  0x18   : > { %s1105_s24 = scalar_lea.sflag [#allocation3], %s219_s9  ;;  %s839_s25 = scalar_lea.hbm %s1094_s14, 128 }
  0x19   : > { %p840_p2 = scmp.ne.s32.totalorder %s1094_s14, %s839_s25  ;;  %p841_p3 = pneg %p1100_p0 }
  0x1a   : > { %s844_s28 = scalar_lea.hbm %s1268_s0, 256  ;;  %p845_p4 = scmp.lt.u32.totalorder %s1094_s14, %s1268_s0 }
  0x1b   : > { %p842_p5 = pnand %p841_p3, %p840_p2  ;;  %p846_p7 = scmp.lt.u32.totalorder %s844_s28, %s839_s25 }
  0x1c   : > { %p848_p13 = scmp.lt.u32.totalorder %s839_s25, %s1094_s14 }
  0x1d   : > { %p843_p6 = pneg %p842_p5  ;;  %p847_p10 = por %p846_p7, %p845_p4 }
  0x1f   : > { %p849_p12 = por %p848_p13, %p847_p10 }
  0x21   : > { %p850_p1 = pnand %p849_p12, %p843_p6 }
  0x23   : > { %853 = shalt.err (!%p850_p1)
}
  0x24   : > { %s854_s9 = scalar_lea.vmem %s1096_s16, 128  ;;  %s985_s12 = smov [#allocation2]  }
  0x25   : > { %p855_p2 = scmp.ne.s32.totalorder %s1096_s16, %s854_s9  ;;  %s859_s13 = sshll.u32 %s985_s12, 4  ;;  %s860_s13 = int_to_ptr.vmem [resolvable:$false] %s859_s13 }
  0x26   : > { %s861_s15 = scalar_lea.vmem %s860_s13, 256  ;;  %p862_p9 = scmp.lt.s32.totalorder %s1096_s16, %s860_s13 }
  0x27   : > { %p857_p5 = pnand %p855_p2, %p841_p3  ;;  %p863_p4 = scmp.lt.s32.totalorder %s861_s15, %s854_s9 }
  0x29   : > { %p858_p11 = pneg %p857_p5  ;;  %p864_p7 = por %p863_p4, %p862_p9 }
  0x2b   : > { %p865_p10 = pnand %p864_p7, %p858_p11 }
  0x2d   : > { %868 = shalt.err (!%p865_p10)
}
  0x2e   : > { %s986_s25 = smov 64   ;;  %s987_s27 = smov 4  }
  0x2f   : > { %761 = dma.hbm_to_vmem [thread:$0]  (!%p1100_p0), %s1094_s14, 128, %s1096_s16, %s1105_s24, %s986_s25, %s986_s25, %s987_s27  }
  0x30   : > { %p267_p12 = scmp.lt.s32.totalorder %s983_s23, 3  ;;  %p1280_p1 = scmp.ge.s32.totalorder %s983_s23, 1 }
  0x32   : > { %p268_p3 = pnand %p1280_p1, %p267_p12 }
  0x33   : > { %s1137_s29 = sand.u32 (!%p268_p3), 1, %s967_s19  }
  0x34   : > { %271 = sbr.rel (%p268_p3) target bundleno = 838 (0x346), region = 36  ;;  %s710_s28 = sshll.u32 (!%p268_p3), %s1137_s29, 3 }
  0x35   : > { %s274_s10 = scalar_lea.sflag (!%p268_p3), [#allocation3], %s1137_s29  ;;  %s277_s11 = scalar_lea.vmem (!%p268_p3), [#allocation2], %s710_s28 }
  0x3b   : > { %950 = dma.done.wait (%p1072_p8), %s274_s10, 128  }
  0x3c   : > { %952 = vsyncadd (%p1072_p8), %s274_s10, 4294967168  ;;  %p327_p9 = scmp.lt.s32.totalorder %s975_s21, 1  ;;  %v988_v0 = vmov 0.0   ;;  %vm989_vm0 = vmmov 0   ;;  %v990_v1 = vmov 0   ;;  %v830_v5 = vld [vmem:[%s277_s11] sm:$0xff]   ;;  %v452_v17 = vlaneseq }
  0x3d   : > { %740 = vmatprep.subr.bf16.mxu0 %v988_v0  ;;  %744 = vmatprep.mubr.msk.bf16.mxu0 %vm989_vm0, %v988_v0  ;;  %vm377_vm1 = vcmask 261120   ;;  %s711_s10 = sshll.u32 %s1137_s29, 4  ;;  %vm476_vm6 = vcmask 7168   ;;  %s509_s9 = scalar_lea.sflag [#allocation4], %s1137_s29 }
  0x3e   : > { %s328_s14 = scalar_select %p327_p9, %s975_s21, 1  ;;  %826 = vset.pattern.permute.xlu1 %v990_v1  ;;  %827 = vset.pattern.permute.xlu0 %v990_v1  ;;  %v1166_v22 = vand.u32 127, %v452_v17 }
  0x3f   : > { %p1281_p11 = scmp.ne.s32.totalorder %s1277_s6, 0 }
  0x40   : > { %s734_s16 = sshll.u32 %s328_s14, 4  ;;  %s334_s27 = scalar_lea.vmem %s1270_s2, %s328_s14 }
  0x41   : > { %s331_s30 = scalar_lea.vmem %s1269_s1, %s734_s16  ;;  %s343_s13 = scalar_lea.vmem %s1271_s3, %s734_s16  ;;  %v717_v7 = vld [vmem:[%s334_s27] ss:$0 sm:$0xff] }
  0x42   : > { %v828_v2 = vld [vmem:[%s331_s30] sm:$0xff]   ;;  %v829_v3 = vld [vmem:[%s331_s30 + $0x8] sm:$0xff]   ;;  %s1162_s16 = scalar_lea.vmem [#allocation5], %s711_s10  ;;  %s736_s14 = sshll.u32 %s975_s21, 8 }
  0x43   : > { %741 = vmatpush3.bf16.msra.mxu0 %v828_v2  ;;  %v424_v4 = vld [vmem:[%s343_s13] sm:$0xff]  ;;  %v425_v6 = vld [vmem:[%s343_s13 + $0x8] sm:$0xff]  ;;  %s529_s11 = sshll.u32 %s1162_s16, 4  ;;  %s1185_s30 = scalar_lea.hbm %s1272_s4, %s736_s14  ;;  %s1179_s11 = int_to_ptr.vmem [resolvable:$true] %s529_s11 }
  0x44   : > { %742 = vmatprep.subr.bf16.mxu0 %v988_v0  ;;  %455 = vperm.xlu1 %826, %v424_v4   ;;  %vm426_vm4 = vcmp.ge.s32.totalorder %v424_v4, 0  ;;  %vm427_vm5 = vcmp.ge.s32.totalorder %v425_v6, 0  ;;  %s869_s12 = scalar_lea.vmem %s1179_s11, 256  ;;  %s991_s13 = smov [#allocation5]  }
  0x45   : > { %v722_v30 = vsel %vm426_vm4, 1.0, %v988_v0  ;;  %v723_v31 = vsel %vm427_vm5, 1.0, %v988_v0  ;;  %p870_p8 = scmp.ne.s32.totalorder %s1179_s11, %s869_s12  ;;  %s873_s15 = sshll.u32 %s991_s13, 4  ;;  %s874_s15 = int_to_ptr.vmem [resolvable:$false] %s873_s15 }
  0x46   : > { %v489_v32 = vsel %vm476_vm6, %v722_v30, 0.0  ;;  %v490_v33 = vsel %vm476_vm6, %v723_v31, 0.0  ;;  %s875_s25 = scalar_lea.vmem %s874_s15, 512  ;;  %p876_p13 = scmp.lt.s32.totalorder %s1179_s11, %s874_s15 }
  0x47   : > { %743 = vmatpush3.bf16.msra.mxu0 %v829_v3  ;;  %v491_v34 = vadd.f32 %v490_v33, %v489_v32  ;;  %p871_p0 = pnand %p870_p8, %p1281_p11  ;;  %p877_p2 = scmp.lt.s32.totalorder %s875_s25, %s869_s12 }
  0x48   : > { %458 = vperm.xlu1 %826, %v425_v6  }
  0x49   : > { %p872_p6 = pneg %p871_p0  ;;  %p878_p5 = por %p877_p2, %p876_p13 }
  0x4a   : > { %745 = vmatmul.mubr.msk.bf16.vlgmr.msra.gmra.mrb[0].mxu0 %vm377_vm1, %v830_v5 }
  0x4b   : > { %p879_p4 = pnand %p878_p5, %p872_p6 }
  0xc3   : > { %v456_v20 = vpop.permute.xlu1 %455 }
  0xc4   : > { %vm460_vm2 = vcmp.eq.s32.totalorder %v1166_v22, %v456_v20 }
  0xc5   : > { %v724_v25 = vsel %vm460_vm2, 1.0, %v988_v0 }
  0xc7   : > { %v459_v23 = vpop.permute.xlu1 %458 }
  0xc8   : > { %vm461_vm3 = vcmp.eq.s32.totalorder %v1166_v22, %v459_v23 }
  0xc9   : > { %v725_v28 = vsel %vm461_vm3, 1.0, %v988_v0 }
 0x11d   : > { %v415_v8 = vpop.f32.mrb[0].mxu0 }
 0x11e   : > { %v416_v9 = vadd.f32 %v717_v7, %v415_v8  ;;  %v746_v10 = vpop.f32.mrb[1].mxu0 }
 0x11f   : > { %v418_v11 = vpop.f32.mrb[2].mxu0 }
 0x120   : > { %422 = vst [vmem:[%s1162_s16] sm:$0xff] %v416_v9  ;;  %v419_v12 = vadd.f32 %v717_v7, %v418_v11  ;;  %432 = vmax.xlane.f32.xlu0 %v416_v9  ;;  %v747_v13 = vpop.f32.mrb[3].mxu0  ;;  %v466_v26 = vmul.f32 %v724_v25, %v416_v9 }
 0x122   : > { %423 = vst [vmem:[%s1162_s16 + $0x8] sm:$0xff] %v419_v12  ;;  %v467_v29 = vmul.f32 %v725_v28, %v419_v12 }
 0x124   : > { %434 = vmax.xlane.f32.xlu0 %v419_v12 }
 0x1ad   : > { %v433_v14 = vpop.xlane.xlu0 %432 }
 0x1ae   : > { %v436_v15 = vsub.f32 %v416_v9, %v433_v14 }
 0x1b0   : > { %v438_v16 = vmul.f32 1.442695, %v436_v15 }
 0x1b1   : > { %v435_v18 = vpop.xlane.xlu0 %434 }
 0x1b2   : > { %831 = vpow2.f32 %v438_v16  ;;  %v437_v19 = vsub.f32 %v419_v12, %v435_v18 }
 0x1b4   : > { %v440_v21 = vmul.f32 1.442695, %v437_v19 }
 0x1b6   : > { %833 = vpow2.f32 %v440_v21 }
 0x1bc   : > { %v832_v24 = vpop.eup %831 }
 0x1bd   : > { %442 = vadd.xlane.f32.xlu0 %v832_v24 }
 0x1c0   : > { %v834_v27 = vpop.eup %833 }
 0x1c1   : > { %468 = vadd.xlane.f32.xlu0 %v466_v26  ;;  %444 = vadd.xlane.f32.xlu1 %v834_v27 }
 0x1c5   : > { %470 = vadd.xlane.f32.xlu0 %v467_v29 }
 0x24a   : > { %v443_v35 = vpop.xlane.xlu0 %442 }
 0x24b   : > { %835 = vlog2.f32 %v443_v35 }
 0x24e   : > { %v445_v36 = vpop.xlane.xlu1 %444  ;;  %v469_v39 = vpop.xlane.xlu0 %468 }
 0x24f   : > { %837 = vlog2.f32 %v445_v36 }
 0x252   : > { %v471_v45 = vpop.xlane.xlu0 %470 }
 0x255   : > { %v836_v37 = vpop.eup %835 }
 0x256   : > { %v447_v38 = vmul.f32 0.6931472, %v836_v37 }
 0x258   : > { %v450_v40 = vadd.f32 %v447_v38, %v433_v14 }
 0x259   : > { %v838_v41 = vpop.eup %837 }
 0x25a   : > { %v449_v42 = vmul.f32 0.6931472, %v838_v41  ;;  %v472_v43 = vsub.f32 %v450_v40, %v469_v39 }
 0x25c   : > { %v451_v44 = vadd.f32 %v449_v42, %v435_v18  ;;  %v474_v46 = vmul.f32 %v722_v30, %v472_v43 }
 0x25e   : > { %v473_v47 = vsub.f32 %v451_v44, %v471_v45  ;;  %v477_v49 = vsel %vm476_vm6, %v474_v46, 0.0 }
 0x260   : > { %v475_v48 = vmul.f32 %v723_v31, %v473_v47 }
 0x262   : > { %v478_v50 = vsel %vm476_vm6, %v475_v48, 0.0 }
 0x263   : > { %v479_v51 = vadd.f32 %v478_v50, %v477_v49 }
 0x265   : > { %480 = vadd.xlane.f32.xlu0 %v479_v51 }
 0x269   : > { %492 = vadd.xlane.f32.xlu0 %v491_v34 }
 0x26a   : > { %882 = shalt.err (!%p879_p4)
}
 0x26b   : > { %s883_s27 = scalar_lea.hbm %s1185_s30, 256  ;;  %s887_s14 = scalar_lea.hbm %s1272_s4, 512 }
 0x26c   : > { %p884_p7 = scmp.ne.s32.totalorder %s1185_s30, %s883_s27  ;;  %p888_p1 = scmp.lt.u32.totalorder %s1185_s30, %s1272_s4 }
 0x26d   : > { %p889_p3 = scmp.lt.u32.totalorder %s887_s14, %s883_s27  ;;  %p891_p8 = scmp.lt.u32.totalorder %s883_s27, %s1185_s30 }
 0x26e   : > { %p885_p10 = pnand %p884_p7, %p1281_p11 }
 0x26f   : > { %p890_p9 = por %p889_p3, %p888_p1 }
 0x270   : > { %p886_p12 = pneg %p885_p10 }
 0x271   : > { %p892_p0 = por %p891_p8, %p890_p9 }
 0x273   : > { %p893_p6 = pnand %p892_p0, %p886_p12 }
 0x275   : > { %896 = shalt.err (!%p893_p6)
}
 0x276   : > { %s992_s12 = smov 128   ;;  %s993_s13 = smov 8   ;;  %vm502_vm7 = vcmp.eq.s32.totalorder %v1166_v22, 1  ;;  %vm501_vm8 = vcmp.eq.s32.totalorder %v1166_v22, 0 }
 0x277   : > { %754 = dma.vmem_to_hbm [thread:$0]  (%p1281_p11), %s1179_s11, 256, %s1185_s30, %s509_s9, %s992_s12, %s992_s12, %s993_s13  }
 0x278   : > { %s730_s11 = sshll.u32 %s975_s21, 7  ;;  %s325_s9 = scalar_lea.vmem [#allocation6], %s710_s28 }
 0x279   : > { %s546_s15 = sshll.u32 %s325_s9, 4  ;;  %s1219_s16 = scalar_lea.hbm %s1273_s5, %s730_s11  ;;  %s1221_s15 = int_to_ptr.vmem [resolvable:$true] %s546_s15 }
 0x27a   : > { %s514_s21 = scalar_lea.sflag [#allocation7], %s1137_s29  ;;  %s897_s28 = scalar_lea.vmem %s1221_s15, 128 }
 0x27b   : > { %p898_p13 = scmp.ne.s32.totalorder %s1221_s15, %s897_s28  ;;  %s994_s14 = smov [#allocation6]  }
 0x27c   : > { %s901_s17 = sshll.u32 %s994_s14, 4  ;;  %s902_s17 = int_to_ptr.vmem [resolvable:$false] %s901_s17 }
 0x27d   : > { %p899_p2 = pnand %p898_p13, %p1281_p11  ;;  %s903_s24 = scalar_lea.vmem %s902_s17, 256 }
 0x27e   : > { %p904_p4 = scmp.lt.s32.totalorder %s1221_s15, %s902_s17  ;;  %p905_p7 = scmp.lt.s32.totalorder %s903_s24, %s897_s28 }
 0x27f   : > { %p900_p5 = pneg %p899_p2 }
 0x280   : > { %p906_p10 = por %p905_p7, %p904_p4 }
 0x282   : > { %p907_p12 = pnand %p906_p10, %p900_p5 }
 0x2f2   : > { %v481_v52 = vpop.xlane.xlu0 %480 }
 0x2f3   : > { %v482_v53 = vrot.slane %v481_v52, 4 }
 0x2f5   : > { %v483_v54 = vadd.f32 %v482_v53, %v481_v52 }
 0x2f6   : > { %v493_v55 = vpop.xlane.xlu0 %492 }
 0x2f7   : > { %v484_v56 = vrot.slane %v483_v54, 2  ;;  %v494_v57 = vrot.slane %v493_v55, 4 }
 0x2f9   : > { %v495_v58 = vadd.f32 %v494_v57, %v493_v55  ;;  %v485_v59 = vadd.f32 %v484_v56, %v483_v54 }
 0x2fb   : > { %v496_v60 = vrot.slane %v495_v58, 2  ;;  %v486_v61 = vrot.slane %v485_v59, 1 }
 0x2fd   : > { %v497_v62 = vadd.f32 %v496_v60, %v495_v58  ;;  %v487_v63 = vadd.f32 %v486_v61, %v485_v59 }
 0x2ff   : > { %748 = vpush %v487_v63  ;;  %v498_v0 = vrot.slane %v497_v62, 1 }
 0x301   : > { %v499_v1 = vadd.f32 %v498_v0, %v497_v62 }
 0x303   : > { %750 = vpush %v499_v1 }
 0x330   : > { %s749_s30 = spop %748 }
 0x331   : > { %v505_v3 = vstv %s749_s30 }
 0x334   : > { %s751_s25 = spop %750 }
 0x335   : > { %v503_v2 = vstv %s751_s25 }
 0x336   : > { %v504_v4 = vsel %vm502_vm7, %v503_v2, 0.0 }
 0x337   : > { %v506_v5 = vsel %vm501_vm8, %v505_v3, %v504_v4 }
 0x338   : > { %507 = vst [vmem:[%s325_s9] sm:$0xff] %v506_v5 }
 0x339   : > { %910 = shalt.err (!%p907_p12)
}
 0x33a   : > { %s911_s29 = scalar_lea.hbm %s1219_s16, 128  ;;  %s915_s11 = scalar_lea.hbm %s1273_s5, 256 }
 0x33b   : > { %p912_p1 = scmp.ne.s32.totalorder %s1219_s16, %s911_s29  ;;  %p916_p8 = scmp.lt.u32.totalorder %s1219_s16, %s1273_s5 }
 0x33c   : > { %p917_p0 = scmp.lt.u32.totalorder %s915_s11, %s911_s29  ;;  %p919_p13 = scmp.lt.u32.totalorder %s911_s29, %s1219_s16 }
 0x33d   : > { %p913_p3 = pnand %p912_p1, %p1281_p11 }
 0x33e   : > { %p918_p6 = por %p917_p0, %p916_p8 }
 0x33f   : > { %p914_p9 = pneg %p913_p3 }
 0x340   : > { %p920_p2 = por %p919_p13, %p918_p6 }
 0x342   : > { %p921_p5 = pnand %p920_p2, %p914_p9 }
 0x344   : > { %924 = shalt.err (!%p921_p5)
}
 0x345   : > { %755 = dma.vmem_to_hbm [thread:$0]  (%p1281_p11), %s1221_s15, 128, %s1219_s16, %s514_s21  }
 0x346 PF: > { %s558_s25 = sand.u32 1, %s963_s18   ;;  %p1282_p4 = scmp.ne.s32.totalorder %s1278_s8, 0 }
 0x347   : > { %p1283_p7 = scmp.ge.s32.totalorder %s983_s23, 2  ;;  %s559_s27 = scalar_lea.sflag [#allocation4], %s558_s25 }
 0x349   : > { %p763_p10 = pnand %p1283_p7, %p1282_p4 }
 0x34b   : > { %954 = dma.done.wait (!%p763_p10), %s559_s27, 256  }
 0x34c   : > { %956 = vsyncadd (!%p763_p10), %s559_s27, 4294967040  ;;  %s568_s10 = scalar_lea.sflag [#allocation7], %s558_s25 }
 0x34d   : > { %958 = dma.done.wait (!%p763_p10), %s568_s10, 128  }
 0x34e   : > { %960 = vsyncadd (!%p763_p10), %s568_s10, 4294967168  ;;  %s25_s23 = sadd.s32 1, %s983_s23   ;;  %s1284_s18 = smov %s967_s19 }
 0x34f   : > { %p22_p12 = scmp.ge.s32.totalorder %s25_s23, 4   ;;  %s1285_s19 = smov %s971_s20 }
 0x350   : > { %s1286_s20 = smov %s1081_s7  ;;  %s1287_s21 = smov %s979_s22 }
 0x351   : > { %s1288_s22 = smov %s1290_s26  ;;  %24 = sbr.rel (!%p22_p12) target bundleno = 8 (0x8), region = 107 }
 0x358   :  { %573 = vsyncpa [#allocation3], 1 }
 0x359   :  { %575 = vsyncpa [#allocation3 + $0x1], 1 }
 0x35a   :  { %576 = vsyncpa [#allocation4], 1 }
 0x35b   :  { %578 = vsyncpa [#allocation4 + $0x1], 1 }
 0x35c   :  { %579 = vsyncpa [#allocation7], 1 }
 0x35d   :  { %581 = vsyncpa [#allocation7 + $0x1], 1 }

</bundles_post_ra>
